<compile_context>
chip_gen: v5e
topology: v5e:2x2
jax: 0.10.0
libtpu: 0.0.40
codegen_flags: <defaults>
</compile_context>

<pallas_src>
import math
import functools

import jax
import jax.numpy as jnp
from jax.experimental import pallas as pl
from jax.experimental.pallas import tpu as pltpu


# ----------------------------------------------------------------------------
# Kernel
# ----------------------------------------------------------------------------
def _lstm_cell_kernel(xh_ref, cx_ref, w_ref, b_ref, hy_ref, cy_ref, *,
                      hidden_size):
    """One batch tile of the LSTM cell.

    xh_ref: [tb, I+H]   (x | hx concatenated, lane-dense K)
    cx_ref: [tb, H]
    w_ref:  [I+H, 4H]   (pre-transposed + stacked, resident across the grid)
    b_ref:  [1, 4H]     (f32)
    hy_ref/cy_ref: [tb, H]
    """
    H = hidden_size

    # One fused gate matmul on the MXU with f32 accumulation.
    gates = jnp.dot(xh_ref[...], w_ref[...],
                    preferred_element_type=jnp.float32) + b_ref[...]

    # NOTE: for H % 128 != 0 these slices are lane-misaligned; padding the gate
    # layout to lane multiples would help, but is irrelevant when H % 128 == 0.
    i_g = jax.nn.sigmoid(gates[:, 0 * H:1 * H])
    f_g = jax.nn.sigmoid(gates[:, 1 * H:2 * H])
    g_g = jnp.tanh(gates[:, 2 * H:3 * H])
    o_g = jax.nn.sigmoid(gates[:, 3 * H:4 * H])

    cx = cx_ref[...].astype(jnp.float32)
    cy = f_g * cx + i_g * g_g
    hy = o_g * jnp.tanh(cy)

    cy_ref[...] = cy.astype(cy_ref.dtype)
    hy_ref[...] = hy.astype(hy_ref.dtype)


# ----------------------------------------------------------------------------
# Wrapper
# ----------------------------------------------------------------------------
def _tpu_vmem_capacity_bytes():
    """Physical VMEM per TensorCore; conservative fallback if query fails."""
    try:
        info = pltpu.get_tpu_info()
        cap = getattr(info, "vmem_capacity_bytes", None)
        if cap:
            return int(cap)
    except Exception:
        pass
    return 64 * 1024 * 1024  # v7x-sized fallback (smallest current generation)


def lstm_cell(x, hx, cx, weight_ih, weight_hh, bias, *,
              block_b=None, matmul_dtype=None):
    """x: [B, I], hx/cx: [B, H], weight_ih: [4H, I], weight_hh: [4H, H],
    bias: [4H]  ->  (hy, cy), each [B, H]."""
    B, I = x.shape
    H = hx.shape[1]
    assert weight_ih.shape == (4 * H, I)
    assert weight_hh.shape == (4 * H, H)
    assert cx.shape == (B, H)

    out_dtype = x.dtype
    mm_dtype = jnp.dtype(matmul_dtype) if matmul_dtype is not None else jnp.dtype(x.dtype)
    IH = I + H

    # Fuse operands once in the wrapper (sanctioned layout plumbing):
    #   gates = [x | hx] @ [W_ih.T ; W_hh.T] + b
    xh = jnp.concatenate([x, hx], axis=1).astype(mm_dtype)                    # [B, I+H]
    w_cat = jnp.concatenate([weight_ih.T, weight_hh.T], axis=0).astype(mm_dtype)  # [I+H, 4H]
    b2d = bias.reshape(1, 4 * H).astype(jnp.float32)

    mm_isz = jnp.dtype(mm_dtype).itemsize
    out_isz = jnp.dtype(out_dtype).itemsize
    cx_isz = jnp.dtype(cx.dtype).itemsize

    # --- VMEM accounting (generation-aware) ---------------------------------
    cap = _tpu_vmem_capacity_bytes()
    budget = int(cap * 0.70)
    # Resident weights/bias: budget for 2 buffers (conservative even though we
    # request single-buffering below).
    weight_bytes = 2 * (IH * 4 * H * mm_isz + 4 * H * 4)
    # Per-batch-row cost: double-buffered in/out tiles + f32 intermediates
    # (gates 4H + i/f/g/o + cx + cy + tanh(cy) ~ 12H more).
    row_bytes = (2 * IH * mm_isz          # xh tile (double-buffered)
                 + 2 * H * cx_isz         # cx tile (double-buffered)
                 + 2 * 2 * H * out_isz    # hy, cy tiles (double-buffered)
                 + 16 * H * 4)            # f32 gates + elementwise temporaries

    if block_b is None:
        avail = max(budget - weight_bytes, 2 * 1024 * 1024)
        fit = max((avail // max(row_bytes, 1)) // 8 * 8, 8)
        # MXU M-dim fill: prefer large tiles (up to 1024 rows).
        block_b = int(min(fit, 1024))

    if B >= 16:
        # Guarantee >= 2 grid steps so the "parallel" batch axis can be
        # sharded across both v7x TensorCores.
        half = ((pl.cdiv(B, 2) + 7) // 8) * 8
        block_b = min(block_b, half)
    if block_b >= B:
        block_b = B                       # full-extent batch block

    grid = (pl.cdiv(B, block_b),)

    required = weight_bytes + block_b * row_bytes + (2 << 20)
    vmem_limit = int(min(max(required, 16 << 20), cap - (2 << 20)))

    kernel = functools.partial(_lstm_cell_kernel, hidden_size=H)
    out_shape = (jax.ShapeDtypeStruct((B, H), out_dtype),
                 jax.ShapeDtypeStruct((B, H), out_dtype))

    def _make_call(single_buffer_weights):
        resident_kw = ({"pipeline_mode": pl.Buffered(1)}
                       if single_buffer_weights else {})
        return pl.pallas_call(
            kernel,
            out_shape=out_shape,
            grid=grid,
            in_specs=[
                pl.BlockSpec((block_b, IH), lambda i: (i, 0)),            # xh tile
                pl.BlockSpec((block_b, H), lambda i: (i, 0)),             # cx tile
                pl.BlockSpec((IH, 4 * H), lambda i: (0, 0), **resident_kw),  # W (resident)
                pl.BlockSpec((1, 4 * H), lambda i: (0, 0), **resident_kw),   # bias (resident)
            ],
            out_specs=[
                pl.BlockSpec((block_b, H), lambda i: (i, 0)),             # hy tile
                pl.BlockSpec((block_b, H), lambda i: (i, 0)),             # cy tile
            ],
            compiler_params=pltpu.CompilerParams(
                dimension_semantics=("parallel",),                        # megacore
                vmem_limit_bytes=vmem_limit),
        )

    try:
        hy, cy = _make_call(single_buffer_weights=True)(xh, cx, w_cat, b2d)
    except Exception:
        # Fallback for builds where Buffered(1) on a pallas_call BlockSpec is
        # not accepted; keeps the kernel runnable everywhere.
        hy, cy = _make_call(single_buffer_weights=False)(xh, cx, w_cat, b2d)
    return hy, cy


# ----------------------------------------------------------------------------
# Main
# ----------------------------------------------------------------------------
def _reference(x, hx, cx, weight_ih, weight_hh, bias):
    gates = x @ weight_ih.T + hx @ weight_hh.T + bias
    ig, fg, gg, og = jnp.split(gates, 4, axis=1)
    cy = jax.nn.sigmoid(fg) * cx + jax.nn.sigmoid(ig) * jnp.tanh(gg)
    hy = jax.nn.sigmoid(og) * jnp.tanh(cy)
    return hy, cy


if __name__ == "__main__":
    B, I, H = 2, 16, 32                      # batch, input_size, hidden_size

    key = jax.random.PRNGKey(0)
    k1, k2, k3, k4, k5, k6 = jax.random.split(key, 6)
    stdv = 1.0 / math.sqrt(H)

    x = jax.random.normal(k1, (B, I), dtype=jnp.float32)
    hx = jax.random.normal(k2, (B, H), dtype=jnp.float32)
    cx = jax.random.normal(k3, (B, H), dtype=jnp.float32)
    weight_ih = jax.random.uniform(k4, (4 * H, I), jnp.float32, -stdv, stdv)
    weight_hh = jax.random.uniform(k5, (4 * H, H), jnp.float32, -stdv, stdv)
    # PyTorch inits bias to 0; use a small random bias here to exercise the add.
    bias = jax.random.uniform(k6, (4 * H,), jnp.float32, -stdv, stdv)

    # --- default (f32 matmul) path: strict check -----------------------------
    hy, cy = lstm_cell(x, hx, cx, weight_ih, weight_hh, bias)
    hy, cy = jax.block_until_ready((hy, cy))
    hy_ref, cy_ref = _reference(x, hx, cx, weight_ih, weight_hh, bias)
    assert hy.shape == (B, H) and cy.shape == (B, H)
    assert jnp.allclose(cy, cy_ref, atol=1e-5, rtol=1e-5), "cy mismatch vs reference"
    assert jnp.allclose(hy, hy_ref, atol=1e-5, rtol=1e-5), "hy mismatch vs reference"

    # --- larger batch: exercises batch tiling + >=2 grid steps ---------------
    kb = jax.random.split(k1, 3)
    B2 = 256
    x2 = jax.random.normal(kb[0], (B2, I), dtype=jnp.float32)
    hx2 = jax.random.normal(kb[1], (B2, H), dtype=jnp.float32)
    cx2 = jax.random.normal(kb[2], (B2, H), dtype=jnp.float32)
    hy2, cy2 = lstm_cell(x2, hx2, cx2, weight_ih, weight_hh, bias)
    hy2, cy2 = jax.block_until_ready((hy2, cy2))
    hy2_ref, cy2_ref = _reference(x2, hx2, cx2, weight_ih, weight_hh, bias)
    assert jnp.allclose(cy2, cy2_ref, atol=1e-5, rtol=1e-5), "cy (B=256) mismatch"
    assert jnp.allclose(hy2, hy2_ref, atol=1e-5, rtol=1e-5), "hy (B=256) mismatch"

    # --- optional bf16 matmul path: loose check ------------------------------
    hy_b, cy_b = lstm_cell(x, hx, cx, weight_ih, weight_hh, bias,
                           matmul_dtype=jnp.bfloat16)
    hy_b, cy_b = jax.block_until_ready((hy_b, cy_b))
    assert jnp.allclose(cy_b, cy_ref, atol=5e-2, rtol=5e-2), "cy (bf16) mismatch"
    assert jnp.allclose(hy_b, hy_ref, atol=5e-2, rtol=5e-2), "hy (bf16) mismatch"

    print("KERNEL_OK")
</pallas_src>

<mosaic_0001>
module attributes {stable_mosaic.version = 11 : i64} {
  func.func @_lstm_cell_kernel(%arg0: i32, %arg1: memref<2x48xf32, #tpu.memory_space<vmem>>, %arg2: memref<2x32xf32, #tpu.memory_space<vmem>>, %arg3: memref<48x128xf32, #tpu.memory_space<vmem>>, %arg4: memref<1x128xf32, #tpu.memory_space<vmem>>, %arg5: memref<2x32xf32, #tpu.memory_space<vmem>>, %arg6: memref<2x32xf32, #tpu.memory_space<vmem>>) attributes {dimension_semantics = [#tpu.dimension_semantics<parallel>], iteration_bounds = array<i64: 1>, scalar_prefetch = 0 : i64, scratch_operands = 0 : i64, tpu.core_type = #tpu.core_type<tc>, window_params = [{transform_indices = @transform_0, window_bounds = array<i64: 2, 48>}, {transform_indices = @transform_1, window_bounds = array<i64: 2, 32>}, {pipeline_mode = #tpu.pipeline_mode<synchronous>, transform_indices = @transform_2, window_bounds = array<i64: 48, 128>}, {pipeline_mode = #tpu.pipeline_mode<synchronous>, transform_indices = @transform_3, window_bounds = array<i64: 1, 128>}, {transform_indices = @transform_4, window_bounds = array<i64: 2, 32>}, {transform_indices = @transform_5, window_bounds = array<i64: 2, 32>}]} {
    %c0 = arith.constant 0 : index
    %c0_0 = arith.constant 0 : index
    %0 = vector.load %arg1[%c0, %c0_0] : memref<2x48xf32, #tpu.memory_space<vmem>>, vector<2x48xf32>
    %c0_1 = arith.constant 0 : index
    %c0_2 = arith.constant 0 : index
    %1 = vector.load %arg3[%c0_1, %c0_2] : memref<48x128xf32, #tpu.memory_space<vmem>>, vector<48x128xf32>
    %cst = arith.constant dense<0.000000e+00> : vector<2x128xf32>
    %2 = tpu.matmul %0, %1, %cst {dimension_numbers = #tpu.dot_dimension_numbers<[1], [0], [0], [1], [0, 0, 1, 1], [], []>} : vector<2x48xf32>, vector<48x128xf32>, vector<2x128xf32> -> vector<2x128xf32>
    %c0_3 = arith.constant 0 : index
    %c0_4 = arith.constant 0 : index
    %3 = vector.load %arg4[%c0_3, %c0_4] : memref<1x128xf32, #tpu.memory_space<vmem>>, vector<1x128xf32>
    %4 = vector.broadcast %3 : vector<1x128xf32> to vector<2x128xf32>
    %5 = arith.addf %2, %4 : vector<2x128xf32>
    %6 = vector.extract_strided_slice %5 {offsets = [0, 0], sizes = [2, 32], strides = [1, 1]} : vector<2x128xf32> to vector<2x32xf32>
    %7 = arith.negf %6 : vector<2x32xf32>
    %8 = math.exp %7 : vector<2x32xf32>
    %cst_5 = arith.constant 1.000000e+00 : f32
    %9 = vector.broadcast %cst_5 : f32 to vector<2x32xf32>
    %10 = arith.addf %9, %8 : vector<2x32xf32>
    %11 = arith.divf %9, %10 : vector<2x32xf32>
    %12 = vector.extract_strided_slice %5 {offsets = [0, 32], sizes = [2, 32], strides = [1, 1]} : vector<2x128xf32> to vector<2x32xf32>
    %13 = arith.negf %12 : vector<2x32xf32>
    %14 = math.exp %13 : vector<2x32xf32>
    %cst_6 = arith.constant 1.000000e+00 : f32
    %15 = vector.broadcast %cst_6 : f32 to vector<2x32xf32>
    %16 = arith.addf %15, %14 : vector<2x32xf32>
    %17 = arith.divf %15, %16 : vector<2x32xf32>
    %18 = vector.extract_strided_slice %5 {offsets = [0, 64], sizes = [2, 32], strides = [1, 1]} : vector<2x128xf32> to vector<2x32xf32>
    %19 = math.tanh %18 : vector<2x32xf32>
    %20 = vector.extract_strided_slice %5 {offsets = [0, 96], sizes = [2, 32], strides = [1, 1]} : vector<2x128xf32> to vector<2x32xf32>
    %21 = arith.negf %20 : vector<2x32xf32>
    %22 = math.exp %21 : vector<2x32xf32>
    %cst_7 = arith.constant 1.000000e+00 : f32
    %23 = vector.broadcast %cst_7 : f32 to vector<2x32xf32>
    %24 = arith.addf %23, %22 : vector<2x32xf32>
    %25 = arith.divf %23, %24 : vector<2x32xf32>
    %c0_8 = arith.constant 0 : index
    %c0_9 = arith.constant 0 : index
    %26 = vector.load %arg2[%c0_8, %c0_9] : memref<2x32xf32, #tpu.memory_space<vmem>>, vector<2x32xf32>
    %27 = arith.mulf %17, %26 : vector<2x32xf32>
    %28 = arith.mulf %11, %19 : vector<2x32xf32>
    %29 = arith.addf %27, %28 : vector<2x32xf32>
    %30 = math.tanh %29 : vector<2x32xf32>
    %31 = arith.mulf %25, %30 : vector<2x32xf32>
    %c0_10 = arith.constant 0 : index
    %c0_11 = arith.constant 0 : index
    %32 = vector.load %arg6[%c0_10, %c0_11] : memref<2x32xf32, #tpu.memory_space<vmem>>, vector<2x32xf32>
    tpu.vector_store %arg6[%c0_10, %c0_11], %29 {strides = array<i32>} : memref<2x32xf32, #tpu.memory_space<vmem>>, vector<2x32xf32>,
    %c0_12 = arith.constant 0 : index
    %c0_13 = arith.constant 0 : index
    %33 = vector.load %arg5[%c0_12, %c0_13] : memref<2x32xf32, #tpu.memory_space<vmem>>, vector<2x32xf32>
    tpu.vector_store %arg5[%c0_12, %c0_13], %31 {strides = array<i32>} : memref<2x32xf32, #tpu.memory_space<vmem>>, vector<2x32xf32>,
    return
  }
  func.func @transform_0(%arg0: i32) -> (i32, i32) {
    %c0_i32 = arith.constant 0 : i32
    %c0_i32_0 = arith.constant 0 : i32
    return %arg0, %c0_i32 : i32, i32
  }
  func.func @transform_1(%arg0: i32) -> (i32, i32) {
    %c0_i32 = arith.constant 0 : i32
    %c0_i32_0 = arith.constant 0 : i32
    return %arg0, %c0_i32 : i32, i32
  }
  func.func @transform_2(%arg0: i32) -> (i32, i32) {
    %c0_i32 = arith.constant 0 : i32
    %c0_i32_0 = arith.constant 0 : i32
    %c0_i32_1 = arith.constant 0 : i32
    return %c0_i32, %c0_i32_0 : i32, i32
  }
  func.func @transform_3(%arg0: i32) -> (i32, i32) {
    %c0_i32 = arith.constant 0 : i32
    %c0_i32_0 = arith.constant 0 : i32
    %c0_i32_1 = arith.constant 0 : i32
    return %c0_i32, %c0_i32_0 : i32, i32
  }
  func.func @transform_4(%arg0: i32) -> (i32, i32) {
    %c0_i32 = arith.constant 0 : i32
    %c0_i32_0 = arith.constant 0 : i32
    return %arg0, %c0_i32 : i32, i32
  }
  func.func @transform_5(%arg0: i32) -> (i32, i32) {
    %c0_i32 = arith.constant 0 : i32
    %c0_i32_0 = arith.constant 0 : i32
    return %arg0, %c0_i32 : i32, i32
  }
}

module attributes {stable_mosaic.version = 11 : i64} {
  func.func @_lstm_cell_kernel(%arg0: i32, %arg1: memref<2x48xf32, #tpu.memory_space<vmem>>, %arg2: memref<2x32xf32, #tpu.memory_space<vmem>>, %arg3: memref<48x128xf32, #tpu.memory_space<vmem>>, %arg4: memref<1x128xf32, #tpu.memory_space<vmem>>, %arg5: memref<2x32xf32, #tpu.memory_space<vmem>>, %arg6: memref<2x32xf32, #tpu.memory_space<vmem>>) attributes {dimension_semantics = [#tpu.dimension_semantics<parallel>], iteration_bounds = array<i64: 1>, scalar_prefetch = 0 : i64, scratch_operands = 0 : i64, tpu.core_type = #tpu.core_type<tc>, window_params = [{transform_indices = @transform_0, window_bounds = array<i64: 2, 48>}, {transform_indices = @transform_1, window_bounds = array<i64: 2, 32>}, {pipeline_mode = #tpu.pipeline_mode<synchronous>, transform_indices = @transform_2, window_bounds = array<i64: 48, 128>}, {pipeline_mode = #tpu.pipeline_mode<synchronous>, transform_indices = @transform_3, window_bounds = array<i64: 1, 128>}, {transform_indices = @transform_4, window_bounds = array<i64: 2, 32>}, {transform_indices = @transform_5, window_bounds = array<i64: 2, 32>}]} {
    %c0 = arith.constant 0 : index
    %c0_0 = arith.constant 0 : index
    %0 = vector.load %arg1[%c0, %c0_0] : memref<2x48xf32, #tpu.memory_space<vmem>>, vector<2x48xf32>
    %c0_1 = arith.constant 0 : index
    %c0_2 = arith.constant 0 : index
    %1 = vector.load %arg3[%c0_1, %c0_2] : memref<48x128xf32, #tpu.memory_space<vmem>>, vector<48x128xf32>
    %cst = arith.constant dense<0.000000e+00> : vector<2x128xf32>
    %2 = tpu.matmul %0, %1, %cst {dimension_numbers = #tpu.dot_dimension_numbers<[1], [0], [0], [1], [0, 0, 1, 1], [], []>} : vector<2x48xf32>, vector<48x128xf32>, vector<2x128xf32> -> vector<2x128xf32>
    %c0_3 = arith.constant 0 : index
    %c0_4 = arith.constant 0 : index
    %3 = vector.load %arg4[%c0_3, %c0_4] : memref<1x128xf32, #tpu.memory_space<vmem>>, vector<1x128xf32>
    %4 = vector.broadcast %3 : vector<1x128xf32> to vector<2x128xf32>
    %5 = arith.addf %2, %4 : vector<2x128xf32>
    %6 = vector.extract_strided_slice %5 {offsets = [0, 0], sizes = [2, 32], strides = [1, 1]} : vector<2x128xf32> to vector<2x32xf32>
    %7 = arith.negf %6 : vector<2x32xf32>
    %8 = math.exp %7 : vector<2x32xf32>
    %cst_5 = arith.constant 1.000000e+00 : f32
    %9 = vector.broadcast %cst_5 : f32 to vector<2x32xf32>
    %10 = arith.addf %9, %8 : vector<2x32xf32>
    %11 = arith.divf %9, %10 : vector<2x32xf32>
    %12 = vector.extract_strided_slice %5 {offsets = [0, 32], sizes = [2, 32], strides = [1, 1]} : vector<2x128xf32> to vector<2x32xf32>
    %13 = arith.negf %12 : vector<2x32xf32>
    %14 = math.exp %13 : vector<2x32xf32>
    %cst_6 = arith.constant 1.000000e+00 : f32
    %15 = vector.broadcast %cst_6 : f32 to vector<2x32xf32>
    %16 = arith.addf %15, %14 : vector<2x32xf32>
    %17 = arith.divf %15, %16 : vector<2x32xf32>
    %18 = vector.extract_strided_slice %5 {offsets = [0, 64], sizes = [2, 32], strides = [1, 1]} : vector<2x128xf32> to vector<2x32xf32>
    %19 = math.tanh %18 : vector<2x32xf32>
    %20 = vector.extract_strided_slice %5 {offsets = [0, 96], sizes = [2, 32], strides = [1, 1]} : vector<2x128xf32> to vector<2x32xf32>
    %21 = arith.negf %20 : vector<2x32xf32>
    %22 = math.exp %21 : vector<2x32xf32>
    %cst_7 = arith.constant 1.000000e+00 : f32
    %23 = vector.broadcast %cst_7 : f32 to vector<2x32xf32>
    %24 = arith.addf %23, %22 : vector<2x32xf32>
    %25 = arith.divf %23, %24 : vector<2x32xf32>
    %c0_8 = arith.constant 0 : index
    %c0_9 = arith.constant 0 : index
    %26 = vector.load %arg2[%c0_8, %c0_9] : memref<2x32xf32, #tpu.memory_space<vmem>>, vector<2x32xf32>
    %27 = arith.mulf %17, %26 : vector<2x32xf32>
    %28 = arith.mulf %11, %19 : vector<2x32xf32>
    %29 = arith.addf %27, %28 : vector<2x32xf32>
    %30 = math.tanh %29 : vector<2x32xf32>
    %31 = arith.mulf %25, %30 : vector<2x32xf32>
    %c0_10 = arith.constant 0 : index
    %c0_11 = arith.constant 0 : index
    %32 = vector.load %arg6[%c0_10, %c0_11] : memref<2x32xf32, #tpu.memory_space<vmem>>, vector<2x32xf32>
    tpu.vector_store %arg6[%c0_10, %c0_11], %29 {strides = array<i32>} : memref<2x32xf32, #tpu.memory_space<vmem>>, vector<2x32xf32>,
    %c0_12 = arith.constant 0 : index
    %c0_13 = arith.constant 0 : index
    %33 = vector.load %arg5[%c0_12, %c0_13] : memref<2x32xf32, #tpu.memory_space<vmem>>, vector<2x32xf32>
    tpu.vector_store %arg5[%c0_12, %c0_13], %31 {strides = array<i32>} : memref<2x32xf32, #tpu.memory_space<vmem>>, vector<2x32xf32>,
    return
  }
  func.func @transform_0(%arg0: i32) -> (i32, i32) {
    %c0_i32 = arith.constant 0 : i32
    %c0_i32_0 = arith.constant 0 : i32
    return %arg0, %c0_i32 : i32, i32
  }
  func.func @transform_1(%arg0: i32) -> (i32, i32) {
    %c0_i32 = arith.constant 0 : i32
    %c0_i32_0 = arith.constant 0 : i32
    return %arg0, %c0_i32 : i32, i32
  }
  func.func @transform_2(%arg0: i32) -> (i32, i32) {
    %c0_i32 = arith.constant 0 : i32
    %c0_i32_0 = arith.constant 0 : i32
    %c0_i32_1 = arith.constant 0 : i32
    return %c0_i32, %c0_i32_0 : i32, i32
  }
  func.func @transform_3(%arg0: i32) -> (i32, i32) {
    %c0_i32 = arith.constant 0 : i32
    %c0_i32_0 = arith.constant 0 : i32
    %c0_i32_1 = arith.constant 0 : i32
    return %c0_i32, %c0_i32_0 : i32, i32
  }
  func.func @transform_4(%arg0: i32) -> (i32, i32) {
    %c0_i32 = arith.constant 0 : i32
    %c0_i32_0 = arith.constant 0 : i32
    return %arg0, %c0_i32 : i32, i32
  }
  func.func @transform_5(%arg0: i32) -> (i32, i32) {
    %c0_i32 = arith.constant 0 : i32
    %c0_i32_0 = arith.constant 0 : i32
    return %arg0, %c0_i32 : i32, i32
  }
}

</mosaic_0001>

<bundles_post_ra>
// kernel: tpu_custom_call.1
= control target key start
LH: loop header
LB: loop body
LE: loop exit
PB: predicated region body
PF: predicated region fallthrough
CT: control target
= control target key end

     0   :  { %11 = vsyncpa [#allocation3], 0  ;;  %s400_s0 = inlined_call_operand.hbm [shape: f32[2,48], index: 0, kind: input, shape index: {}]   ;;  %s401_s1 = inlined_call_operand.hbm [shape: f32[2,32], index: 1, kind: input, shape index: {}]   ;;  %s402_s2 = inlined_call_operand.hbm [shape: f32[48,128], index: 2, kind: input, shape index: {}]   ;;  %s403_s3 = inlined_call_operand.vmem [shape: f32[1,128], index: 3, kind: input, shape index: {}]   ;;  %s404_s4 = inlined_call_operand.hbm [shape: f32[2,32], index: 4, kind: output, shape index: {0}]   ;;  %s405_s5 = inlined_call_operand.hbm [shape: f32[2,32], index: 5, kind: output, shape index: {1}]  }
   0x1   :  { %12 = vsyncpa [#allocation6], 0 }
   0x2   :  { %13 = vsyncpa [#allocation4], 0  ;;  %s31_s20 = sshll.u32 %s401_s1, 4  ;;  %s32_s20 = int_to_ptr.hbm [resolvable:$true] %s31_s20 }
   0x3   :  { %14 = vsyncpa [#allocation10], 0  ;;  %s335_s21 = smov [#allocation5]   ;;  %s20_s25 = sshll.u32 %s400_s0, 4  ;;  %s21_s25 = int_to_ptr.hbm [resolvable:$true] %s20_s25 }
   0x4   :  { %s33_s22 = sshll.u32 %s335_s21, 4  ;;  %s336_s26 = smov [#allocation2]   ;;  %s34_s22 = int_to_ptr.vmem [resolvable:$true] %s33_s22 }
   0x5   :  { %36 = dma.hbm_to_vmem [thread:$0]  %s32_s20, 32, %s34_s22, [#allocation6]  }
   0x6   :  { %s22_s27 = sshll.u32 %s336_s26, 4  ;;  %s41_s30 = sshll.u32 %s402_s2, 4  ;;  %s23_s27 = int_to_ptr.vmem [resolvable:$true] %s22_s27  ;;  %s42_s30 = int_to_ptr.hbm [resolvable:$true] %s41_s30 }
   0x7   :  { %25 = dma.hbm_to_vmem [thread:$0]  %s21_s25, 32, %s23_s27, [#allocation3]  }
   0x8   :  { %s337_s1 = smov [#allocation7]   ;;  %s338_s7 = smov 128  }
   0x9   :  { %s43_s6 = sshll.u32 %s337_s1, 4  ;;  %s339_s8 = smov 8   ;;  %s44_s6 = int_to_ptr.vmem [resolvable:$true] %s43_s6 }
   0xa   :  { %49 = dma.hbm_to_vmem [thread:$0]  %s42_s30, 768, %s44_s6, [#allocation6], %s338_s7, %s338_s7, %s339_s8  }
   0xb   :  { %327 = dma.done.wait [#allocation3], 32  }
   0xc   :  { %328 = vsyncadd [#allocation3], 4294967264 }
   0xd   :  { %329 = dma.done.wait [#allocation6], 800  }
   0xe   :  { %330 = vsyncadd [#allocation6], 4294966496  ;;  %v70_v0 = vld [vmem:[#allocation7 + $0x28] sm:$0xff]  ;;  %v69_v1 = vld [vmem:[#allocation7 + $0x20] sm:$0xff]  ;;  %vm75_vm0 = vcmask 392192   ;;  %s340_s9 = smov 64  }
   0xf   :  { %89 = vmatpush.msra.mxu0 %v70_v0  ;;  %v68_v2 = vld [vmem:[#allocation7 + $0x18] sm:$0xff]  ;;  %v67_v3 = vld [vmem:[#allocation7 + $0x10] sm:$0xff]  ;;  %v66_v4 = vld [vmem:[#allocation7 + $0x8] sm:$0xff]  ;;  %s341_s10 = smov 32   ;;  %vm145_vm5 = vcmask 254976   ;;  %s343_s11 = smov [#allocation9]  }
  0x10   :  { %v65_v5 = vld [vmem:[#allocation7] sm:$0xff]  ;;  %v64_v6 = vld [vmem:[#allocation2] sm:$0x3]  ;;  %v119_v11 = vld [vmem:[#allocation5] sm:$0x3]  ;;  %s168_s12 = sshll.u32 %s343_s11, 4  ;;  %s169_s12 = int_to_ptr.vmem [resolvable:$true] %s168_s12 }
  0x11   :  { %90 = vmatpush.msra.mxu0 %v69_v1  ;;  %v198_v7 = vld [vmem:[%s403_s3] ss:$0 sm:$0xff]  ;;  %s342_s3 = smov 96   ;;  %s170_s15 = sshll.u32 %s405_s5, 4  ;;  %s171_s15 = int_to_ptr.hbm [resolvable:$true] %s170_s15 }
  0x12   :  { %s344_s16 = smov [#allocation8]   ;;  %s159_s20 = sshll.u32 %s404_s4, 4  ;;  %s160_s20 = int_to_ptr.hbm [resolvable:$true] %s159_s20 }
  0x13   :  { %91 = vmatpush.msra.mxu0 %v68_v2  ;;  %s157_s17 = sshll.u32 %s344_s16, 4  ;;  %s158_s17 = int_to_ptr.vmem [resolvable:$true] %s157_s17 }
  0x15   :  { %92 = vmatpush.msra.mxu0 %v67_v3 }
  0x17   :  { %93 = vmatpush.msra.mxu0 %v66_v4 }
  0x19   :  { %94 = vmatpush.msra.mxu0 %v65_v5 }
  0x1a   :  { %186 = vmatmul.msk.f32.vlgmr.msra.gmra.mxu0 %vm75_vm0, %v64_v6 }
  0x97   :  { %v96_v8 = vpop.f32.mrf.mxu0 }
  0x98   :  { %v97_v9 = vadd.f32 %v198_v7, %v96_v8 }
  0x9a   :  { %199 = vtanh.f32 %v97_v9  ;;  %v187_v12 = vmul.f32 -1.442695, %v97_v9 }
  0x9c   :  { %201 = vpow2.f32 %v187_v12 }
  0xa0   :  { %v200_v10 = vpop.eup %199 }
  0xa1   :  { %126 = vrot.lane.b32.xlu0 %v200_v10, %s340_s9 }
  0xa2   :  { %v202_v13 = vpop.eup %201 }
  0xa3   :  { %v102_v14 = vadd.f32 1.0, %v202_v13 }
  0xa5   :  { %203 = vrcp.f32 %v102_v14  ;;  %v114_v20 = vand.u32 2147483648, %v102_v14  ;;  %vm108_vm2 = vweird.f32 %v102_v14  ;;  %v112_v21 = vand.u32 2147483647, %v102_v14 }
  0xa7   :  { %v115_v23 = vor.u32 1.1754944e-38, %v114_v20  ;;  %vm113_vm4 = vcmp.eq.f32.partialorder %v112_v21, 8.507059e+37 }
  0xa9   :  { %121 = vrot.lane.b32.xlu0 %v119_v11, %s341_s10 }
  0xab   :  { %v204_v15 = vpop.eup %203 }
  0xac   :  { %v104_v16 = vmul.f32 %v204_v15, %v102_v14  ;;  %vm109_vm1 = vweird.f32 %v204_v15 }
  0xad   :  { %vm110_vm3 = vmor %vm108_vm2, %vm109_vm1 }
  0xae   :  { %v105_v17 = vsub.f32 1.0, %v104_v16 }
  0xb0   :  { %v106_v18 = vmul.f32 %v204_v15, %v105_v17 }
  0xb2   :  { %v107_v19 = vadd.f32 %v204_v15, %v106_v18 }
  0xb4   :  { %v111_v22 = vsel %vm110_vm3, %v204_v15, %v107_v19 }
  0xb5   :  { %v116_v25 = vsel %vm113_vm4, %v115_v23, %v111_v22 }
 0x113   :  { %v127_v24 = vpop.permute.xlu0 %126 }
 0x114   :  { %v129_v26 = vmul.f32 %v127_v24, %v116_v25 }
 0x116   :  { %131 = vrot.lane.b32.xlu1 %v129_v26, %s341_s10 }
 0x11b   :  { %v122_v27 = vpop.permute.xlu0 %121 }
 0x11c   :  { %v124_v28 = vmul.f32 %v122_v27, %v116_v25 }
 0x188   :  { %v132_v29 = vpop.permute.xlu1 %131 }
 0x189   :  { %v134_v30 = vadd.f32 %v132_v29, %v124_v28 }
 0x18b   :  { %205 = vtanh.f32 %v134_v30  ;;  %142 = vrot.lane.b32.xlu2 %v134_v30, %s342_s3 }
 0x191   :  { %v206_v31 = vpop.eup %205 }
 0x192   :  { %137 = vrot.lane.b32.xlu1 %v206_v31, %s340_s9 }
 0x1e5   :  { %v143_v32 = vpop.permute.xlu2 %142 }
 0x1e6   :  { %146 = vst.msk [vmem:[#allocation9] sm:$0x3] %vm145_vm5, %v143_v32 }
 0x1e7   :  { %173 = dma.vmem_to_hbm [thread:$0]  %s169_s12, 32, %s171_s15, [#allocation10]  }
 0x204   :  { %v138_v33 = vpop.permute.xlu1 %137 }
 0x205   :  { %v140_v34 = vmul.f32 %v138_v33, %v116_v25 }
 0x207   :  { %148 = vrot.lane.b32.xlu2 %v140_v34, %s341_s10 }
 0x261   :  { %v149_v35 = vpop.permute.xlu2 %148 }
 0x262   :  { %151 = vst.msk [vmem:[#allocation8] sm:$0x3] %vm145_vm5, %v149_v35 }
 0x263   :  { %162 = dma.vmem_to_hbm [thread:$0]  %s158_s17, 32, %s160_s20, [#allocation4]  }
 0x264   :  { %331 = dma.done.wait [#allocation4], 32  }
 0x265   :  { %332 = vsyncadd [#allocation4], 4294967264 }
 0x266   :  { %333 = dma.done.wait [#allocation10], 32  }
 0x267   :  { %334 = vsyncadd [#allocation10], 4294967264 }
 0x268   :  { %182 = vsyncpa [#allocation3], 1 }
 0x269   :  { %183 = vsyncpa [#allocation6], 1 }
 0x26a   :  { %184 = vsyncpa [#allocation4], 1 }
 0x26b   :  { %185 = vsyncpa [#allocation10], 1 }

// kernel: tpu_custom_call.1
= control target key start
LH: loop header
LB: loop body
LE: loop exit
PB: predicated region body
PF: predicated region fallthrough
CT: control target
= control target key end

     0   :  { %11 = vsyncpa [#allocation3], 0  ;;  %s400_s0 = inlined_call_operand.hbm [shape: f32[2,48], index: 0, kind: input, shape index: {}]   ;;  %s401_s1 = inlined_call_operand.hbm [shape: f32[2,32], index: 1, kind: input, shape index: {}]   ;;  %s402_s2 = inlined_call_operand.hbm [shape: f32[48,128], index: 2, kind: input, shape index: {}]   ;;  %s403_s3 = inlined_call_operand.vmem [shape: f32[1,128], index: 3, kind: input, shape index: {}]   ;;  %s404_s4 = inlined_call_operand.hbm [shape: f32[2,32], index: 4, kind: output, shape index: {0}]   ;;  %s405_s5 = inlined_call_operand.hbm [shape: f32[2,32], index: 5, kind: output, shape index: {1}]  }
   0x1   :  { %12 = vsyncpa [#allocation6], 0 }
   0x2   :  { %13 = vsyncpa [#allocation4], 0  ;;  %s31_s20 = sshll.u32 %s401_s1, 4  ;;  %s32_s20 = int_to_ptr.hbm [resolvable:$true] %s31_s20 }
   0x3   :  { %14 = vsyncpa [#allocation10], 0  ;;  %s335_s21 = smov [#allocation5]   ;;  %s20_s25 = sshll.u32 %s400_s0, 4  ;;  %s21_s25 = int_to_ptr.hbm [resolvable:$true] %s20_s25 }
   0x4   :  { %s33_s22 = sshll.u32 %s335_s21, 4  ;;  %s336_s26 = smov [#allocation2]   ;;  %s34_s22 = int_to_ptr.vmem [resolvable:$true] %s33_s22 }
   0x5   :  { %36 = dma.hbm_to_vmem [thread:$0]  %s32_s20, 32, %s34_s22, [#allocation6]  }
   0x6   :  { %s22_s27 = sshll.u32 %s336_s26, 4  ;;  %s41_s30 = sshll.u32 %s402_s2, 4  ;;  %s23_s27 = int_to_ptr.vmem [resolvable:$true] %s22_s27  ;;  %s42_s30 = int_to_ptr.hbm [resolvable:$true] %s41_s30 }
   0x7   :  { %25 = dma.hbm_to_vmem [thread:$0]  %s21_s25, 32, %s23_s27, [#allocation3]  }
   0x8   :  { %s337_s1 = smov [#allocation7]   ;;  %s338_s7 = smov 128  }
   0x9   :  { %s43_s6 = sshll.u32 %s337_s1, 4  ;;  %s339_s8 = smov 8   ;;  %s44_s6 = int_to_ptr.vmem [resolvable:$true] %s43_s6 }
   0xa   :  { %49 = dma.hbm_to_vmem [thread:$0]  %s42_s30, 768, %s44_s6, [#allocation6], %s338_s7, %s338_s7, %s339_s8  }
   0xb   :  { %327 = dma.done.wait [#allocation3], 32  }
   0xc   :  { %328 = vsyncadd [#allocation3], 4294967264 }
   0xd   :  { %329 = dma.done.wait [#allocation6], 800  }
   0xe   :  { %330 = vsyncadd [#allocation6], 4294966496  ;;  %v70_v0 = vld [vmem:[#allocation7 + $0x28] sm:$0xff]  ;;  %v69_v1 = vld [vmem:[#allocation7 + $0x20] sm:$0xff]  ;;  %vm75_vm0 = vcmask 392192   ;;  %s340_s9 = smov 64  }
   0xf   :  { %89 = vmatpush.msra.mxu0 %v70_v0  ;;  %v68_v2 = vld [vmem:[#allocation7 + $0x18] sm:$0xff]  ;;  %v67_v3 = vld [vmem:[#allocation7 + $0x10] sm:$0xff]  ;;  %v66_v4 = vld [vmem:[#allocation7 + $0x8] sm:$0xff]  ;;  %s341_s10 = smov 32   ;;  %vm145_vm5 = vcmask 254976   ;;  %s343_s11 = smov [#allocation9]  }
  0x10   :  { %v65_v5 = vld [vmem:[#allocation7] sm:$0xff]  ;;  %v64_v6 = vld [vmem:[#allocation2] sm:$0x3]  ;;  %v119_v11 = vld [vmem:[#allocation5] sm:$0x3]  ;;  %s168_s12 = sshll.u32 %s343_s11, 4  ;;  %s169_s12 = int_to_ptr.vmem [resolvable:$true] %s168_s12 }
  0x11   :  { %90 = vmatpush.msra.mxu0 %v69_v1  ;;  %v198_v7 = vld [vmem:[%s403_s3] ss:$0 sm:$0xff]  ;;  %s342_s3 = smov 96   ;;  %s170_s15 = sshll.u32 %s405_s5, 4  ;;  %s171_s15 = int_to_ptr.hbm [resolvable:$true] %s170_s15 }
  0x12   :  { %s344_s16 = smov [#allocation8]   ;;  %s159_s20 = sshll.u32 %s404_s4, 4  ;;  %s160_s20 = int_to_ptr.hbm [resolvable:$true] %s159_s20 }
  0x13   :  { %91 = vmatpush.msra.mxu0 %v68_v2  ;;  %s157_s17 = sshll.u32 %s344_s16, 4  ;;  %s158_s17 = int_to_ptr.vmem [resolvable:$true] %s157_s17 }
  0x15   :  { %92 = vmatpush.msra.mxu0 %v67_v3 }
  0x17   :  { %93 = vmatpush.msra.mxu0 %v66_v4 }
  0x19   :  { %94 = vmatpush.msra.mxu0 %v65_v5 }
  0x1a   :  { %186 = vmatmul.msk.f32.vlgmr.msra.gmra.mxu0 %vm75_vm0, %v64_v6 }
  0x97   :  { %v96_v8 = vpop.f32.mrf.mxu0 }
  0x98   :  { %v97_v9 = vadd.f32 %v198_v7, %v96_v8 }
  0x9a   :  { %199 = vtanh.f32 %v97_v9  ;;  %v187_v12 = vmul.f32 -1.442695, %v97_v9 }
  0x9c   :  { %201 = vpow2.f32 %v187_v12 }
  0xa0   :  { %v200_v10 = vpop.eup %199 }
  0xa1   :  { %126 = vrot.lane.b32.xlu0 %v200_v10, %s340_s9 }
  0xa2   :  { %v202_v13 = vpop.eup %201 }
  0xa3   :  { %v102_v14 = vadd.f32 1.0, %v202_v13 }
  0xa5   :  { %203 = vrcp.f32 %v102_v14  ;;  %v114_v20 = vand.u32 2147483648, %v102_v14  ;;  %vm108_vm2 = vweird.f32 %v102_v14  ;;  %v112_v21 = vand.u32 2147483647, %v102_v14 }
  0xa7   :  { %v115_v23 = vor.u32 1.1754944e-38, %v114_v20  ;;  %vm113_vm4 = vcmp.eq.f32.partialorder %v112_v21, 8.507059e+37 }
  0xa9   :  { %121 = vrot.lane.b32.xlu0 %v119_v11, %s341_s10 }
  0xab   :  { %v204_v15 = vpop.eup %203 }
  0xac   :  { %v104_v16 = vmul.f32 %v204_v15, %v102_v14  ;;  %vm109_vm1 = vweird.f32 %v204_v15 }
  0xad   :  { %vm110_vm3 = vmor %vm108_vm2, %vm109_vm1 }
  0xae   :  { %v105_v17 = vsub.f32 1.0, %v104_v16 }
  0xb0   :  { %v106_v18 = vmul.f32 %v204_v15, %v105_v17 }
  0xb2   :  { %v107_v19 = vadd.f32 %v204_v15, %v106_v18 }
  0xb4   :  { %v111_v22 = vsel %vm110_vm3, %v204_v15, %v107_v19 }
  0xb5   :  { %v116_v25 = vsel %vm113_vm4, %v115_v23, %v111_v22 }
 0x113   :  { %v127_v24 = vpop.permute.xlu0 %126 }
 0x114   :  { %v129_v26 = vmul.f32 %v127_v24, %v116_v25 }
 0x116   :  { %131 = vrot.lane.b32.xlu1 %v129_v26, %s341_s10 }
 0x11b   :  { %v122_v27 = vpop.permute.xlu0 %121 }
 0x11c   :  { %v124_v28 = vmul.f32 %v122_v27, %v116_v25 }
 0x188   :  { %v132_v29 = vpop.permute.xlu1 %131 }
 0x189   :  { %v134_v30 = vadd.f32 %v132_v29, %v124_v28 }
 0x18b   :  { %205 = vtanh.f32 %v134_v30  ;;  %142 = vrot.lane.b32.xlu2 %v134_v30, %s342_s3 }
 0x191   :  { %v206_v31 = vpop.eup %205 }
 0x192   :  { %137 = vrot.lane.b32.xlu1 %v206_v31, %s340_s9 }
 0x1e5   :  { %v143_v32 = vpop.permute.xlu2 %142 }
 0x1e6   :  { %146 = vst.msk [vmem:[#allocation9] sm:$0x3] %vm145_vm5, %v143_v32 }
 0x1e7   :  { %173 = dma.vmem_to_hbm [thread:$0]  %s169_s12, 32, %s171_s15, [#allocation10]  }
 0x204   :  { %v138_v33 = vpop.permute.xlu1 %137 }
 0x205   :  { %v140_v34 = vmul.f32 %v138_v33, %v116_v25 }
 0x207   :  { %148 = vrot.lane.b32.xlu2 %v140_v34, %s341_s10 }
 0x261   :  { %v149_v35 = vpop.permute.xlu2 %148 }
 0x262   :  { %151 = vst.msk [vmem:[#allocation8] sm:$0x3] %vm145_vm5, %v149_v35 }
 0x263   :  { %162 = dma.vmem_to_hbm [thread:$0]  %s158_s17, 32, %s160_s20, [#allocation4]  }
 0x264   :  { %331 = dma.done.wait [#allocation4], 32  }
 0x265   :  { %332 = vsyncadd [#allocation4], 4294967264 }
 0x266   :  { %333 = dma.done.wait [#allocation10], 32  }
 0x267   :  { %334 = vsyncadd [#allocation10], 4294967264 }
 0x268   :  { %182 = vsyncpa [#allocation3], 1 }
 0x269   :  { %183 = vsyncpa [#allocation6], 1 }
 0x26a   :  { %184 = vsyncpa [#allocation4], 1 }
 0x26b   :  { %185 = vsyncpa [#allocation10], 1 }

</bundles_post_ra>
